<compile_context>
chip_gen: v7x
topology: tpu7x:2x2x1
jax: 0.10.0
libtpu: 0.0.40
codegen_flags: <defaults>
</compile_context>

<pallas_src>
import functools

import jax
import jax.numpy as jnp
import numpy as np
from jax.experimental import pallas as pl
from jax.experimental.pallas import tpu as pltpu

TB_MAX = 128  # default upper bound for the batch tile (tunable)


def _round_up(n, m):
    return -(-n // m) * m


def _choose_tb(batch, tb_max=TB_MAX):
    """Largest batch tile <= tb_max (multiple of 8); keep >= 2 grid steps when
    the batch allows so the 'parallel' axis spans both TensorCores on v7x."""
    bp8 = _round_up(max(int(batch), 1), 8)
    if bp8 <= 8:
        return 8
    if bp8 <= tb_max:
        return _round_up(-(-bp8 // 2), 8)
    return tb_max


# --------------------------- fused Pallas kernel ---------------------------

def _fused_mnist_kernel(x_ref, a1_ref, b1_ref, a2_ref, b2_ref,
                        wfc1_ref, bfc1_ref, wfc2_ref, bfc2_ref, out_ref, *, tb):
    """Whole Net forward for one batch tile of `tb` images, entirely in VMEM.

    Layouts (all lane-dense, 128-padded):
      stage-1 rows: [dh1, p1, u1, b] (24*tb), K = i1*28 + w_in (140),
              cols: [dw1 | pw1*10 + oc] (2*128)
      stage-2 rows: [dh2, ph2, b]    (8*tb),  K = i2*128 + pw1*10 + c (640),
              cols: [dw2 | pw2*20 + oc] (2*128)
    so every 2x2 maxpool is a max of two tile-aligned slices (row halves or
    128-lane column halves) and each conv stage is a single MXU matmul.
    """
    f32 = jnp.float32
    bf16 = jnp.bfloat16

    # ---- conv1 (1->10, 5x5): one K=140 matmul + fused 2x2 maxpool + bias + relu
    lhs1 = x_ref[0]                                                  # (24*tb, 140) bf16
    acc1 = jnp.dot(lhs1, a1_ref[...], preferred_element_type=f32)    # (24*tb, 256)
    p1 = jnp.maximum(acc1[:, :128], acc1[:, 128:])                   # pool over W (dw1)
    p1 = jnp.maximum(p1[:12 * tb], p1[12 * tb:])                     # pool over H (dh1)
    h1 = jnp.maximum(p1 + b1_ref[...], 0.0)                          # (12*tb, 128) rows [p1,u1,b]

    # ---- conv2 (10->20, 5x5): all 5 H-bands folded into one K=640 matmul
    bands = []
    for i2 in range(5):
        halves = []
        for dh2 in range(2):
            r = dh2 + i2
            p, a = r % 2, r // 2
            start = (p * 6 + a) * tb
            halves.append(h1[start:start + 4 * tb])                  # (4*tb, 128) rows [ph2,b]
        bands.append(jnp.concatenate(halves, axis=0).astype(bf16))   # (8*tb, 128) rows [dh2,ph2,b]
    lhs2 = jnp.concatenate(bands, axis=1)                            # (8*tb, 640)
    acc2 = jnp.dot(lhs2, a2_ref[...], preferred_element_type=f32)    # (8*tb, 256)
    p2 = jnp.maximum(acc2[:, :128], acc2[:, 128:])                   # pool over W (dw2)
    p2 = jnp.maximum(p2[:4 * tb], p2[4 * tb:])                       # pool over H (dh2)
    h2 = jnp.maximum(p2 + b2_ref[...], 0.0)                          # (4*tb, 128) rows [ph2,b]

    # ---- flatten -> fc1 -> relu -> fc2 -> log_softmax
    # TODO(synk): dropout / dropout2d are identity (eval mode).
    lhs3 = jnp.concatenate(
        [h2[p * tb:(p + 1) * tb].astype(bf16) for p in range(4)], axis=1)  # (tb, 512)
    fc1 = jnp.dot(lhs3, wfc1_ref[...], preferred_element_type=f32)   # (tb, 128)
    fc1 = jnp.maximum(fc1 + bfc1_ref[...], 0.0)
    logits = jnp.dot(fc1.astype(bf16), wfc2_ref[...],
                     preferred_element_type=f32) + bfc2_ref[...]     # (tb, 128); pad lanes ~ -1e30
    m = jnp.max(logits, axis=-1, keepdims=True)
    lse = m + jnp.log(jnp.sum(jnp.exp(logits - m), axis=-1, keepdims=True))
    out_ref[...] = logits - lse                                      # real log-probs in lanes [0:10)


# --------------------- weight preprocessing (hoisted) -----------------------

def prepare_weights(params):
    """Turn PyTorch-layout weights into MXU-friendly banded, 128-padded
    matrices.  Call ONCE at model load; pass the result to ddp_mnist_forward."""
    w1 = jnp.asarray(params["conv1_w"], jnp.float32)    # (10, 1, 5, 5)
    b1 = jnp.asarray(params["conv1_b"], jnp.float32)    # (10,)
    w2 = jnp.asarray(params["conv2_w"], jnp.float32)    # (20, 10, 5, 5)
    b2 = jnp.asarray(params["conv2_b"], jnp.float32)    # (20,)
    fc1_w = jnp.asarray(params["fc1_w"], jnp.float32)   # (320, 50)
    fc1_b = jnp.asarray(params["fc1_b"], jnp.float32)   # (50,)
    fc2_w = jnp.asarray(params["fc2_w"], jnp.float32)   # (50, 10)
    fc2_b = jnp.asarray(params["fc2_b"], jnp.float32)   # (10,)

    lane = np.arange(128)

    # conv1 banded matrix A1: (140, 256), rows = i1*28 + w_in,
    # cols = dw1*128 + pw1*10 + oc  (cols with rem >= 120 are zero padding).
    row1 = np.arange(140)[:, None]
    i1, w_in = row1 // 28, row1 % 28
    col1 = np.arange(256)[None, :]
    dw1, rem1 = col1 // 128, col1 % 128
    pw1, oc1 = rem1 // 10, rem1 % 10
    j1 = w_in - (2 * pw1 + dw1)
    valid1 = (rem1 < 120) & (j1 >= 0) & (j1 <= 4)
    a1 = jnp.where(valid1, w1[oc1, 0, i1, np.clip(j1, 0, 4)], 0.0).astype(jnp.bfloat16)
    b1t = jnp.where(lane < 120, b1[lane % 10], 0.0).reshape(1, 128).astype(jnp.float32)

    # conv2 banded matrix A2: (640, 256), rows = i2*128 + pw1*10 + c,
    # cols = dw2*128 + pw2*20 + oc.  All 5 H-bands folded into K.
    row2 = np.arange(640)[:, None]
    i2, rr2 = row2 // 128, row2 % 128
    pw1r, cin = rr2 // 10, rr2 % 10
    col2 = np.arange(256)[None, :]
    dw2, rem2 = col2 // 128, col2 % 128
    pw2, oc2 = rem2 // 20, rem2 % 20
    j2 = pw1r - (2 * pw2 + dw2)
    valid2 = (rr2 < 120) & (rem2 < 80) & (j2 >= 0) & (j2 <= 4)
    a2 = jnp.where(valid2, w2[oc2, cin, i2, np.clip(j2, 0, 4)], 0.0).astype(jnp.bfloat16)
    b2t = jnp.where(lane < 80, b2[lane % 20], 0.0).reshape(1, 128).astype(jnp.float32)

    # fc1 weight permuted to the kernel layout: row = ph2*128 + pw2*20 + c,
    # gathered from the NCHW flatten order feat = c*16 + ph2*4 + pw2; 128 cols.
    rowf = np.arange(512)
    ph2f, rrf = rowf // 128, rowf % 128
    pw2f, cf = rrf // 20, rrf % 20
    vf = rrf < 80
    src = np.where(vf, cf * 16 + ph2f * 4 + pw2f, 0)
    wfc1_core = jnp.where(vf[:, None], fc1_w[src, :], 0.0)            # (512, 50)
    wfc1 = jnp.zeros((512, 128), jnp.float32).at[:, :50].set(wfc1_core).astype(jnp.bfloat16)
    bfc1 = jnp.zeros((1, 128), jnp.float32).at[0, :50].set(fc1_b)

    # fc2 padded to 128x128; pad logits get a -1e30 "bias" so log_softmax
    # over 128 lanes reduces to the real 10 classes.
    wfc2 = jnp.zeros((128, 128), jnp.float32).at[:50, :10].set(fc2_w).astype(jnp.bfloat16)
    bfc2 = jnp.full((1, 128), -1e30, jnp.float32).at[0, :10].set(fc2_b)

    return (a1, b1t, a2, b2t, wfc1, bfc1, wfc2, bfc2)


# ------------------------------- forward -----------------------------------

def ddp_mnist_forward(packed, x, *, tb_max=TB_MAX):
    """Forward pass of DistributedDataParallel(Net) on a single device.

    packed: output of prepare_weights(params) (precomputed once at model load).
    x: (B, 1, 28, 28) float32 NCHW.  Returns (B, 10) log-probabilities.
    """
    # TODO(synk): DDP weight broadcast / grad all-reduce hooks omitted (no
    # meaning for a single-device forward kernel).
    a1, b1t, a2, b2t, wfc1, bfc1, wfc2, bfc2 = packed
    B = x.shape[0]
    tb = _choose_tb(B, tb_max)
    grid_n = -(-B // tb)
    Bp = grid_n * tb

    # im2col-lite in the wrapper: one contiguous, leading-axis-tiled, bf16,
    # K-dense LHS per batch tile.  Rows [dh1, p1, u1, b] with output H row
    # oh = 4*u1 + 2*p1 + dh1; K index = i1*28 + w.
    xs = x.reshape(B, 28, 28).astype(jnp.bfloat16)
    if Bp != B:
        xs = jnp.concatenate([xs, jnp.zeros((Bp - B, 28, 28), jnp.bfloat16)], axis=0)
    order = np.array([4 * u1 + 2 * p1 + dh1
                      for dh1 in range(2) for p1 in range(2) for u1 in range(6)])
    ih = order[:, None] + np.arange(5)[None, :]                        # (24, 5) input-H rows
    lhs1 = xs[:, ih, :]                                                # (Bp, 24, 5, 28)
    lhs1 = lhs1.reshape(grid_n, tb, 24, 140).transpose(0, 2, 1, 3)
    lhs1 = lhs1.reshape(grid_n, 24 * tb, 140)                          # contiguous per tile

    flops = grid_n * 2 * (24 * tb * 140 * 256 + 8 * tb * 640 * 256
                          + tb * 512 * 128 + tb * 128 * 128)
    bytes_accessed = (lhs1.size * 2 + Bp * 128 * 4
                      + (a1.size + a2.size + wfc1.size + wfc2.size) * 2
                      + (b1t.size + b2t.size + bfc1.size + bfc2.size) * 4)

    out = pl.pallas_call(
        functools.partial(_fused_mnist_kernel, tb=tb),
        out_shape=jax.ShapeDtypeStruct((Bp, 128), jnp.float32),
        grid_spec=pltpu.PrefetchScalarGridSpec(
            num_scalar_prefetch=0,
            grid=(grid_n,),
            in_specs=[
                pl.BlockSpec((1, 24 * tb, 140), lambda i: (i, 0, 0)),  # input tile (contiguous DMA)
                pl.BlockSpec((140, 256), lambda i: (0, 0)),            # conv1 banded w (K folded)
                pl.BlockSpec((1, 128), lambda i: (0, 0)),              # conv1 bias
                pl.BlockSpec((640, 256), lambda i: (0, 0)),            # conv2 banded w (K folded)
                pl.BlockSpec((1, 128), lambda i: (0, 0)),              # conv2 bias
                pl.BlockSpec((512, 128), lambda i: (0, 0)),            # fc1 w (permuted, padded)
                pl.BlockSpec((1, 128), lambda i: (0, 0)),              # fc1 bias
                pl.BlockSpec((128, 128), lambda i: (0, 0)),            # fc2 w (padded)
                pl.BlockSpec((1, 128), lambda i: (0, 0)),              # fc2 bias + lane mask
            ],
            out_specs=pl.BlockSpec((tb, 128), lambda i: (i, 0)),       # lane-dense output
        ),
        compiler_params=pltpu.CompilerParams(
            dimension_semantics=("parallel",),
            vmem_limit_bytes=32 * 1024 * 1024,
        ),
        cost_estimate=pl.CostEstimate(
            flops=flops,
            transcendentals=grid_n * tb * 129,
            bytes_accessed=bytes_accessed,
        ),
    )(lhs1, a1, b1t, a2, b2t, wfc1, bfc1, wfc2, bfc2)
    return out[:B, :10]


def init_params(key):
    ks = jax.random.split(key, 8)
    scale = 0.1
    return {
        "conv1_w": scale * jax.random.normal(ks[0], (10, 1, 5, 5), jnp.float32),
        "conv1_b": scale * jax.random.normal(ks[1], (10,), jnp.float32),
        "conv2_w": scale * jax.random.normal(ks[2], (20, 10, 5, 5), jnp.float32),
        "conv2_b": scale * jax.random.normal(ks[3], (20,), jnp.float32),
        "fc1_w": scale * jax.random.normal(ks[4], (320, 50), jnp.float32),
        "fc1_b": scale * jax.random.normal(ks[5], (50,), jnp.float32),
        "fc2_w": scale * jax.random.normal(ks[6], (50, 10), jnp.float32),
        "fc2_b": scale * jax.random.normal(ks[7], (10,), jnp.float32),
    }


if __name__ == "__main__":
    key = jax.random.PRNGKey(0)
    k_params, k_x = jax.random.split(key)
    params = init_params(k_params)
    packed = prepare_weights(params)   # hoisted: done once at model load
    # MNIST-shaped input (forward implies 28x28 so fc1 sees 20*4*4 = 320 features)
    x = jax.random.normal(k_x, (2, 1, 28, 28), jnp.float32)

    fwd = jax.jit(ddp_mnist_forward)
    out = jax.block_until_ready(fwd(packed, x))

    assert out.shape == (2, 10), out.shape
    # log_softmax rows should exponentiate-and-sum to ~1
    row_sums = jnp.sum(jnp.exp(out), axis=-1)
    assert bool(jnp.all(jnp.abs(row_sums - 1.0) < 1e-3)), row_sums
    assert bool(jnp.all(jnp.isfinite(out)))

    print("KERNEL_OK")
</pallas_src>

<mosaic_0001>
module attributes {stable_mosaic.version = 11 : i64} {
  func.func @_fused_mnist_kernel(%arg0: i32, %arg1: memref<1x192x140xbf16, #tpu.memory_space<vmem>>, %arg2: memref<140x256xbf16, #tpu.memory_space<vmem>>, %arg3: memref<1x128xf32, #tpu.memory_space<vmem>>, %arg4: memref<640x256xbf16, #tpu.memory_space<vmem>>, %arg5: memref<1x128xf32, #tpu.memory_space<vmem>>, %arg6: memref<512x128xbf16, #tpu.memory_space<vmem>>, %arg7: memref<1x128xf32, #tpu.memory_space<vmem>>, %arg8: memref<128x128xbf16, #tpu.memory_space<vmem>>, %arg9: memref<1x128xf32, #tpu.memory_space<vmem>>, %arg10: memref<8x128xf32, #tpu.memory_space<vmem>>) attributes {dimension_semantics = [#tpu.dimension_semantics<parallel>], iteration_bounds = array<i64: 1>, scalar_prefetch = 0 : i64, scratch_operands = 0 : i64, tpu.core_type = #tpu.core_type<tc>, window_params = [{transform_indices = @transform_0, window_bounds = array<i64: 1, 192, 140>}, {pipeline_mode = #tpu.pipeline_mode<synchronous>, transform_indices = @transform_1, window_bounds = array<i64: 140, 256>}, {pipeline_mode = #tpu.pipeline_mode<synchronous>, transform_indices = @transform_2, window_bounds = array<i64: 1, 128>}, {pipeline_mode = #tpu.pipeline_mode<synchronous>, transform_indices = @transform_3, window_bounds = array<i64: 640, 256>}, {pipeline_mode = #tpu.pipeline_mode<synchronous>, transform_indices = @transform_4, window_bounds = array<i64: 1, 128>}, {pipeline_mode = #tpu.pipeline_mode<synchronous>, transform_indices = @transform_5, window_bounds = array<i64: 512, 128>}, {pipeline_mode = #tpu.pipeline_mode<synchronous>, transform_indices = @transform_6, window_bounds = array<i64: 1, 128>}, {pipeline_mode = #tpu.pipeline_mode<synchronous>, transform_indices = @transform_7, window_bounds = array<i64: 128, 128>}, {pipeline_mode = #tpu.pipeline_mode<synchronous>, transform_indices = @transform_8, window_bounds = array<i64: 1, 128>}, {transform_indices = @transform_9, window_bounds = array<i64: 8, 128>}]} {
    %c0 = arith.constant 0 : index
    %c0_0 = arith.constant 0 : index
    %c0_1 = arith.constant 0 : index
    %0 = vector.load %arg1[%c0, %c0_0, %c0_1] : memref<1x192x140xbf16, #tpu.memory_space<vmem>>, vector<1x192x140xbf16>
    %1 = vector.shape_cast %0 : vector<1x192x140xbf16> to vector<192x140xbf16>
    %c0_2 = arith.constant 0 : index
    %c0_3 = arith.constant 0 : index
    %2 = vector.load %arg2[%c0_2, %c0_3] : memref<140x256xbf16, #tpu.memory_space<vmem>>, vector<140x256xbf16>
    %cst = arith.constant dense<0.000000e+00> : vector<192x256xf32>
    %3 = tpu.matmul %1, %2, %cst {dimension_numbers = #tpu.dot_dimension_numbers<[1], [0], [0], [1], [0, 0, 1, 1], [], []>} : vector<192x140xbf16>, vector<140x256xbf16>, vector<192x256xf32> -> vector<192x256xf32>
    %4 = vector.extract_strided_slice %3 {offsets = [0, 0], sizes = [192, 128], strides = [1, 1]} : vector<192x256xf32> to vector<192x128xf32>
    %5 = vector.extract_strided_slice %3 {offsets = [0, 128], sizes = [192, 128], strides = [1, 1]} : vector<192x256xf32> to vector<192x128xf32>
    %6 = arith.maximumf %4, %5 : vector<192x128xf32>
    %7 = vector.extract_strided_slice %6 {offsets = [0, 0], sizes = [96, 128], strides = [1, 1]} : vector<192x128xf32> to vector<96x128xf32>
    %8 = vector.extract_strided_slice %6 {offsets = [96, 0], sizes = [96, 128], strides = [1, 1]} : vector<192x128xf32> to vector<96x128xf32>
    %9 = arith.maximumf %7, %8 : vector<96x128xf32>
    %c0_4 = arith.constant 0 : index
    %c0_5 = arith.constant 0 : index
    %10 = vector.load %arg3[%c0_4, %c0_5] : memref<1x128xf32, #tpu.memory_space<vmem>>, vector<1x128xf32>
    %11 = vector.broadcast %10 : vector<1x128xf32> to vector<96x128xf32>
    %12 = arith.addf %9, %11 : vector<96x128xf32>
    %cst_6 = arith.constant 0.000000e+00 : f32
    %13 = vector.broadcast %cst_6 : f32 to vector<96x128xf32>
    %14 = arith.maximumf %12, %13 : vector<96x128xf32>
    %15 = vector.extract_strided_slice %14 {offsets = [0, 0], sizes = [32, 128], strides = [1, 1]} : vector<96x128xf32> to vector<32x128xf32>
    %16 = vector.extract_strided_slice %14 {offsets = [48, 0], sizes = [32, 128], strides = [1, 1]} : vector<96x128xf32> to vector<32x128xf32>
    %17 = tpu.concatenate %15, %16 in 0 : vector<32x128xf32>, vector<32x128xf32> -> vector<64x128xf32>
    %18 = arith.truncf %17 : vector<64x128xf32> to vector<64x128xbf16>
    %19 = vector.extract_strided_slice %14 {offsets = [48, 0], sizes = [32, 128], strides = [1, 1]} : vector<96x128xf32> to vector<32x128xf32>
    %20 = vector.extract_strided_slice %14 {offsets = [8, 0], sizes = [32, 128], strides = [1, 1]} : vector<96x128xf32> to vector<32x128xf32>
    %21 = tpu.concatenate %19, %20 in 0 : vector<32x128xf32>, vector<32x128xf32> -> vector<64x128xf32>
    %22 = arith.truncf %21 : vector<64x128xf32> to vector<64x128xbf16>
    %23 = vector.extract_strided_slice %14 {offsets = [8, 0], sizes = [32, 128], strides = [1, 1]} : vector<96x128xf32> to vector<32x128xf32>
    %24 = vector.extract_strided_slice %14 {offsets = [56, 0], sizes = [32, 128], strides = [1, 1]} : vector<96x128xf32> to vector<32x128xf32>
    %25 = tpu.concatenate %23, %24 in 0 : vector<32x128xf32>, vector<32x128xf32> -> vector<64x128xf32>
    %26 = arith.truncf %25 : vector<64x128xf32> to vector<64x128xbf16>
    %27 = vector.extract_strided_slice %14 {offsets = [56, 0], sizes = [32, 128], strides = [1, 1]} : vector<96x128xf32> to vector<32x128xf32>
    %28 = vector.extract_strided_slice %14 {offsets = [16, 0], sizes = [32, 128], strides = [1, 1]} : vector<96x128xf32> to vector<32x128xf32>
    %29 = tpu.concatenate %27, %28 in 0 : vector<32x128xf32>, vector<32x128xf32> -> vector<64x128xf32>
    %30 = arith.truncf %29 : vector<64x128xf32> to vector<64x128xbf16>
    %31 = vector.extract_strided_slice %14 {offsets = [16, 0], sizes = [32, 128], strides = [1, 1]} : vector<96x128xf32> to vector<32x128xf32>
    %32 = vector.extract_strided_slice %14 {offsets = [64, 0], sizes = [32, 128], strides = [1, 1]} : vector<96x128xf32> to vector<32x128xf32>
    %33 = tpu.concatenate %31, %32 in 0 : vector<32x128xf32>, vector<32x128xf32> -> vector<64x128xf32>
    %34 = arith.truncf %33 : vector<64x128xf32> to vector<64x128xbf16>
    %35 = tpu.concatenate %18, %22, %26, %30, %34 in 1 : vector<64x128xbf16>, vector<64x128xbf16>, vector<64x128xbf16>, vector<64x128xbf16>, vector<64x128xbf16> -> vector<64x640xbf16>
    %c0_7 = arith.constant 0 : index
    %c0_8 = arith.constant 0 : index
    %36 = vector.load %arg4[%c0_7, %c0_8] : memref<640x256xbf16, #tpu.memory_space<vmem>>, vector<640x256xbf16>
    %cst_9 = arith.constant dense<0.000000e+00> : vector<64x256xf32>
    %37 = tpu.matmul %35, %36, %cst_9 {dimension_numbers = #tpu.dot_dimension_numbers<[1], [0], [0], [1], [0, 0, 1, 1], [], []>} : vector<64x640xbf16>, vector<640x256xbf16>, vector<64x256xf32> -> vector<64x256xf32>
    %38 = vector.extract_strided_slice %37 {offsets = [0, 0], sizes = [64, 128], strides = [1, 1]} : vector<64x256xf32> to vector<64x128xf32>
    %39 = vector.extract_strided_slice %37 {offsets = [0, 128], sizes = [64, 128], strides = [1, 1]} : vector<64x256xf32> to vector<64x128xf32>
    %40 = arith.maximumf %38, %39 : vector<64x128xf32>
    %41 = vector.extract_strided_slice %40 {offsets = [0, 0], sizes = [32, 128], strides = [1, 1]} : vector<64x128xf32> to vector<32x128xf32>
    %42 = vector.extract_strided_slice %40 {offsets = [32, 0], sizes = [32, 128], strides = [1, 1]} : vector<64x128xf32> to vector<32x128xf32>
    %43 = arith.maximumf %41, %42 : vector<32x128xf32>
    %c0_10 = arith.constant 0 : index
    %c0_11 = arith.constant 0 : index
    %44 = vector.load %arg5[%c0_10, %c0_11] : memref<1x128xf32, #tpu.memory_space<vmem>>, vector<1x128xf32>
    %45 = vector.broadcast %44 : vector<1x128xf32> to vector<32x128xf32>
    %46 = arith.addf %43, %45 : vector<32x128xf32>
    %cst_12 = arith.constant 0.000000e+00 : f32
    %47 = vector.broadcast %cst_12 : f32 to vector<32x128xf32>
    %48 = arith.maximumf %46, %47 : vector<32x128xf32>
    %49 = vector.extract_strided_slice %48 {offsets = [0, 0], sizes = [8, 128], strides = [1, 1]} : vector<32x128xf32> to vector<8x128xf32>
    %50 = arith.truncf %49 : vector<8x128xf32> to vector<8x128xbf16>
    %51 = vector.extract_strided_slice %48 {offsets = [8, 0], sizes = [8, 128], strides = [1, 1]} : vector<32x128xf32> to vector<8x128xf32>
    %52 = arith.truncf %51 : vector<8x128xf32> to vector<8x128xbf16>
    %53 = vector.extract_strided_slice %48 {offsets = [16, 0], sizes = [8, 128], strides = [1, 1]} : vector<32x128xf32> to vector<8x128xf32>
    %54 = arith.truncf %53 : vector<8x128xf32> to vector<8x128xbf16>
    %55 = vector.extract_strided_slice %48 {offsets = [24, 0], sizes = [8, 128], strides = [1, 1]} : vector<32x128xf32> to vector<8x128xf32>
    %56 = arith.truncf %55 : vector<8x128xf32> to vector<8x128xbf16>
    %57 = tpu.concatenate %50, %52, %54, %56 in 1 : vector<8x128xbf16>, vector<8x128xbf16>, vector<8x128xbf16>, vector<8x128xbf16> -> vector<8x512xbf16>
    %c0_13 = arith.constant 0 : index
    %c0_14 = arith.constant 0 : index
    %58 = vector.load %arg6[%c0_13, %c0_14] : memref<512x128xbf16, #tpu.memory_space<vmem>>, vector<512x128xbf16>
    %cst_15 = arith.constant dense<0.000000e+00> : vector<8x128xf32>
    %59 = tpu.matmul %57, %58, %cst_15 {dimension_numbers = #tpu.dot_dimension_numbers<[1], [0], [0], [1], [0, 0, 1, 1], [], []>} : vector<8x512xbf16>, vector<512x128xbf16>, vector<8x128xf32> -> vector<8x128xf32>
    %c0_16 = arith.constant 0 : index
    %c0_17 = arith.constant 0 : index
    %60 = vector.load %arg7[%c0_16, %c0_17] : memref<1x128xf32, #tpu.memory_space<vmem>>, vector<1x128xf32>
    %61 = vector.broadcast %60 : vector<1x128xf32> to vector<8x128xf32>
    %62 = arith.addf %59, %61 : vector<8x128xf32>
    %cst_18 = arith.constant 0.000000e+00 : f32
    %63 = vector.broadcast %cst_18 : f32 to vector<8x128xf32>
    %64 = arith.maximumf %62, %63 : vector<8x128xf32>
    %65 = arith.truncf %64 : vector<8x128xf32> to vector<8x128xbf16>
    %c0_19 = arith.constant 0 : index
    %c0_20 = arith.constant 0 : index
    %66 = vector.load %arg8[%c0_19, %c0_20] : memref<128x128xbf16, #tpu.memory_space<vmem>>, vector<128x128xbf16>
    %cst_21 = arith.constant dense<0.000000e+00> : vector<8x128xf32>
    %67 = tpu.matmul %65, %66, %cst_21 {dimension_numbers = #tpu.dot_dimension_numbers<[1], [0], [0], [1], [0, 0, 1, 1], [], []>} : vector<8x128xbf16>, vector<128x128xbf16>, vector<8x128xf32> -> vector<8x128xf32>
    %c0_22 = arith.constant 0 : index
    %c0_23 = arith.constant 0 : index
    %68 = vector.load %arg9[%c0_22, %c0_23] : memref<1x128xf32, #tpu.memory_space<vmem>>, vector<1x128xf32>
    %69 = vector.broadcast %68 : vector<1x128xf32> to vector<8x128xf32>
    %70 = arith.addf %67, %69 : vector<8x128xf32>
    %cst_24 = arith.constant dense<0xFF800000> : vector<8xf32>
    %71 = vector.multi_reduction <maximumf>, %70, %cst_24 [1] : vector<8x128xf32> to vector<8xf32>
    %72 = vector.shape_cast %71 : vector<8xf32> to vector<8x1xf32>
    %73 = vector.broadcast %72 : vector<8x1xf32> to vector<8x128xf32>
    %74 = arith.subf %70, %73 : vector<8x128xf32>
    %75 = math.exp %74 : vector<8x128xf32>
    %cst_25 = arith.constant dense<0.000000e+00> : vector<8xf32>
    %76 = vector.multi_reduction <add>, %75, %cst_25 [1] : vector<8x128xf32> to vector<8xf32>
    %77 = vector.shape_cast %76 : vector<8xf32> to vector<8x1xf32>
    %78 = math.log %77 : vector<8x1xf32>
    %79 = arith.addf %72, %78 : vector<8x1xf32>
    %80 = vector.broadcast %79 : vector<8x1xf32> to vector<8x128xf32>
    %81 = arith.subf %70, %80 : vector<8x128xf32>
    %c0_26 = arith.constant 0 : index
    %c0_27 = arith.constant 0 : index
    %82 = vector.load %arg10[%c0_26, %c0_27] : memref<8x128xf32, #tpu.memory_space<vmem>>, vector<8x128xf32>
    tpu.vector_store %arg10[%c0_26, %c0_27], %81 {strides = array<i32>} : memref<8x128xf32, #tpu.memory_space<vmem>>, vector<8x128xf32>,
    return
  }
  func.func @transform_0(%arg0: i32) -> (i32, i32, i32) {
    %c0_i32 = arith.constant 0 : i32
    %c0_i32_0 = arith.constant 0 : i32
    %c0_i32_1 = arith.constant 0 : i32
    return %arg0, %c0_i32, %c0_i32_0 : i32, i32, i32
  }
  func.func @transform_1(%arg0: i32) -> (i32, i32) {
    %c0_i32 = arith.constant 0 : i32
    %c0_i32_0 = arith.constant 0 : i32
    %c0_i32_1 = arith.constant 0 : i32
    return %c0_i32, %c0_i32_0 : i32, i32
  }
  func.func @transform_2(%arg0: i32) -> (i32, i32) {
    %c0_i32 = arith.constant 0 : i32
    %c0_i32_0 = arith.constant 0 : i32
    %c0_i32_1 = arith.constant 0 : i32
    return %c0_i32, %c0_i32_0 : i32, i32
  }
  func.func @transform_3(%arg0: i32) -> (i32, i32) {
    %c0_i32 = arith.constant 0 : i32
    %c0_i32_0 = arith.constant 0 : i32
    %c0_i32_1 = arith.constant 0 : i32
    return %c0_i32, %c0_i32_0 : i32, i32
  }
  func.func @transform_4(%arg0: i32) -> (i32, i32) {
    %c0_i32 = arith.constant 0 : i32
    %c0_i32_0 = arith.constant 0 : i32
    %c0_i32_1 = arith.constant 0 : i32
    return %c0_i32, %c0_i32_0 : i32, i32
  }
  func.func @transform_5(%arg0: i32) -> (i32, i32) {
    %c0_i32 = arith.constant 0 : i32
    %c0_i32_0 = arith.constant 0 : i32
    %c0_i32_1 = arith.constant 0 : i32
    return %c0_i32, %c0_i32_0 : i32, i32
  }
  func.func @transform_6(%arg0: i32) -> (i32, i32) {
    %c0_i32 = arith.constant 0 : i32
    %c0_i32_0 = arith.constant 0 : i32
    %c0_i32_1 = arith.constant 0 : i32
    return %c0_i32, %c0_i32_0 : i32, i32
  }
  func.func @transform_7(%arg0: i32) -> (i32, i32) {
    %c0_i32 = arith.constant 0 : i32
    %c0_i32_0 = arith.constant 0 : i32
    %c0_i32_1 = arith.constant 0 : i32
    return %c0_i32, %c0_i32_0 : i32, i32
  }
  func.func @transform_8(%arg0: i32) -> (i32, i32) {
    %c0_i32 = arith.constant 0 : i32
    %c0_i32_0 = arith.constant 0 : i32
    %c0_i32_1 = arith.constant 0 : i32
    return %c0_i32, %c0_i32_0 : i32, i32
  }
  func.func @transform_9(%arg0: i32) -> (i32, i32) {
    %c0_i32 = arith.constant 0 : i32
    %c0_i32_0 = arith.constant 0 : i32
    return %arg0, %c0_i32 : i32, i32
  }
}

</mosaic_0001>

<bundles_post_ra>
// kernel: ddp_mnist_forward.1
= control target key start
LH: loop header
LB: loop body
LE: loop exit
PB: predicated region body
PF: predicated region fallthrough
CT: control target
= control target key end

     0   :  { %vm271_vm0 = vcmask 97280   ;;  %vm308_vm1 = vcmask 1045504   ;;  %vm2263_vm2 = vmmov 0   ;;  %s2928_s1 = inlined_call_operand.vmem [shape: bf16[140,256], index: 1, kind: input, shape index: {}]   ;;  %s2929_s0 = inlined_call_operand.vmem [shape: bf16[1,192,140], index: 0, kind: input, shape index: {}]   ;;  %s2930_s3 = inlined_call_operand.vmem [shape: bf16[640,256], index: 3, kind: input, shape index: {}]   ;;  %s2931_s2 = inlined_call_operand.vmem [shape: f32[1,128], index: 2, kind: input, shape index: {}]   ;;  %s2932_s5 = inlined_call_operand.vmem [shape: bf16[512,128], index: 5, kind: input, shape index: {}]   ;;  %s2933_s4 = inlined_call_operand.vmem [shape: f32[1,128], index: 4, kind: input, shape index: {}]   ;;  %s2934_s7 = inlined_call_operand.vmem [shape: bf16[128,128], index: 7, kind: input, shape index: {}]   ;;  %s2935_s6 = inlined_call_operand.vmem [shape: f32[1,128], index: 6, kind: input, shape index: {}]   ;;  %s2936_s8 = inlined_call_operand.vmem [shape: f32[1,128], index: 8, kind: input, shape index: {}]   ;;  %s2937_s9 = inlined_call_operand.vmem [shape: f32[8,128], index: 9, kind: output, shape index: {}]  }
   0x1   :  { %v2034_v0 = vld [vmem:[%s2928_s1 + $0x4] ss:$8 sps:$4 sm:$0xff]   ;;  %v2036_v1 = vld [vmem:[%s2928_s1] ss:$8 sps:$4 sm:$0xff]   ;;  %v2037_v2 = vld [vmem:[%s2928_s1 + $0x14] ss:$8 sps:$4 sm:$0xff]  }
   0x2   :  { %315 = vmatprep.subr.bf16.mxu0 %v2034_v0  ;;  %v2039_v3 = vld [vmem:[%s2928_s1 + $0x10] ss:$8 sps:$4 sm:$0xff]   ;;  %v2040_v4 = vld [vmem:[%s2928_s1 + $0x24] ss:$8 sps:$4 sm:$0xff]   ;;  %v2042_v5 = vld [vmem:[%s2928_s1 + $0x20] ss:$8 sps:$4 sm:$0xff]  }
   0x3   :  { %316 = vmatpush1.bf16.msra.mxu0 %v2036_v1  ;;  %v2043_v6 = vld [vmem:[%s2928_s1 + $0x34] ss:$8 sps:$4 sm:$0xff]   ;;  %v2045_v7 = vld [vmem:[%s2928_s1 + $0x30] ss:$8 sps:$4 sm:$0xff]   ;;  %v2046_v8 = vld [vmem:[%s2928_s1 + $0x44] ss:$8 sps:$4 sm:$0xff]  }
   0x4   :  { %317 = vmatprep.subr.bf16.mxu0 %v2037_v2  ;;  %v2063_v9 = vld [vmem:[%s2929_s0 + $0x4] ss:$8 sps:$4 sm:$0xff]   ;;  %v2048_v10 = vld [vmem:[%s2928_s1 + $0x40] ss:$8 sps:$4 sm:$0xff]   ;;  %v2049_v11 = vld [vmem:[%s2928_s1 + $0x54] ss:$8 sps:$4 sm:$0xff]  }
   0x5   :  { %1790 = vmatprep.mubr.msk.bf16.mxu0 %vm271_vm0, %v2063_v9  ;;  %v2051_v12 = vld [vmem:[%s2928_s1 + $0x50] ss:$8 sps:$4 sm:$0xff]   ;;  %v2052_v13 = vld [vmem:[%s2928_s1 + $0x64] ss:$8 sps:$4 sm:$0xff]   ;;  %v2054_v14 = vld [vmem:[%s2928_s1 + $0x60] ss:$8 sps:$4 sm:$0xff]  }
   0x6   :  { %v2055_v15 = vld [vmem:[%s2928_s1 + $0x74] ss:$8 sps:$4 sm:$0xff]   ;;  %v2057_v16 = vld [vmem:[%s2928_s1 + $0x70] ss:$8 sps:$4 sm:$0xff]   ;;  %v2061_v20 = vld [vmem:[%s2929_s0] ss:$8 sps:$4 sm:$0xff]  }
   0x7   :  { %318 = vmatpush1.bf16.msra.mxu0 %v2039_v3  ;;  %v2058_v17 = vld [vmem:[%s2928_s1 + $0x84] ss:$8 sps:$4 sm:$0x3f]   ;;  %v2060_v18 = vld [vmem:[%s2928_s1 + $0x80] ss:$8 sps:$4 sm:$0x3f]  }
   0x8   :  { %319 = vmatprep.subr.bf16.mxu0 %v2040_v4  ;;  %v310_v19 = vsel %vm308_vm1, %v2060_v18, 0  ;;  %v2064_v21 = vld [vmem:[%s2929_s0 + $0x14] ss:$8 sps:$4 sm:$0xff]   ;;  %v2066_v22 = vld [vmem:[%s2929_s0 + $0x10] ss:$8 sps:$4 sm:$0xff]  }
   0x9   :  { %v2067_v23 = vld [vmem:[%s2929_s0 + $0x24] ss:$8 sps:$4 sm:$0xff]   ;;  %v2069_v24 = vld [vmem:[%s2929_s0 + $0x20] ss:$8 sps:$4 sm:$0xff]   ;;  %v2070_v25 = vld [vmem:[%s2929_s0 + $0x34] ss:$8 sps:$4 sm:$0xff]  }
   0xa   :  { %v2072_v26 = vld [vmem:[%s2929_s0 + $0x30] ss:$8 sps:$4 sm:$0xff]   ;;  %v2073_v27 = vld [vmem:[%s2929_s0 + $0x44] ss:$8 sps:$4 sm:$0xff]   ;;  %v2075_v28 = vld [vmem:[%s2929_s0 + $0x40] ss:$8 sps:$4 sm:$0xff]  }
   0xb   :  { %320 = vmatpush1.bf16.msra.mxu0 %v2042_v5  ;;  %v2076_v29 = vld [vmem:[%s2929_s0 + $0x54] ss:$8 sps:$4 sm:$0xff]   ;;  %v2078_v30 = vld [vmem:[%s2929_s0 + $0x50] ss:$8 sps:$4 sm:$0xff]   ;;  %v2079_v31 = vld [vmem:[%s2929_s0 + $0x64] ss:$8 sps:$4 sm:$0xff]  }
   0xc   :  { %321 = vmatprep.subr.bf16.mxu0 %v2043_v6  ;;  %v2081_v32 = vld [vmem:[%s2929_s0 + $0x60] ss:$8 sps:$4 sm:$0xff]   ;;  %v2082_v33 = vld [vmem:[%s2929_s0 + $0x74] ss:$8 sps:$4 sm:$0xff]   ;;  %v2084_v34 = vld [vmem:[%s2929_s0 + $0x70] ss:$8 sps:$4 sm:$0xff]  }
   0xd   :  { %v2085_v35 = vld [vmem:[%s2929_s0 + $0x84] ss:$8 sps:$4 sm:$0xff]   ;;  %v2087_v36 = vld [vmem:[%s2929_s0 + $0x80] ss:$8 sps:$4 sm:$0xff]   ;;  %v2088_v37 = vld [vmem:[%s2929_s0 + $0x94] ss:$8 sps:$4 sm:$0xff]  }
   0xe   :  { %v2090_v38 = vld [vmem:[%s2929_s0 + $0x90] ss:$8 sps:$4 sm:$0xff]   ;;  %v2091_v39 = vld [vmem:[%s2929_s0 + $0xa4] ss:$8 sps:$4 sm:$0xff]   ;;  %v2093_v40 = vld [vmem:[%s2929_s0 + $0xa0] ss:$8 sps:$4 sm:$0xff]  }
   0xf   :  { %322 = vmatpush1.bf16.msra.mxu0 %v2045_v7  ;;  %v2094_v41 = vld [vmem:[%s2929_s0 + $0xb4] ss:$8 sps:$4 sm:$0xff]   ;;  %v2096_v42 = vld [vmem:[%s2929_s0 + $0xb0] ss:$8 sps:$4 sm:$0xff]   ;;  %v2097_v43 = vld [vmem:[%s2930_s3 + $0x4] ss:$8 sps:$4 sm:$0xff]  }
  0x10   :  { %323 = vmatprep.subr.bf16.mxu0 %v2046_v8  ;;  %v2099_v44 = vld [vmem:[%s2930_s3] ss:$8 sps:$4 sm:$0xff]   ;;  %1025 = vmatprep.subr.bf16.mxu1 %v2097_v43  ;;  %v2100_v45 = vld [vmem:[%s2930_s3 + $0x14] ss:$8 sps:$4 sm:$0xff]   ;;  %v2102_v46 = vld [vmem:[%s2930_s3 + $0x10] ss:$8 sps:$4 sm:$0xff]  }
  0x11   :  { %1026 = vmatpush1.bf16.msra.mxu1 %v2099_v44  ;;  %v2103_v47 = vld [vmem:[%s2930_s3 + $0x24] ss:$8 sps:$4 sm:$0xff]   ;;  %v2105_v48 = vld [vmem:[%s2930_s3 + $0x20] ss:$8 sps:$4 sm:$0xff]   ;;  %v2106_v49 = vld [vmem:[%s2930_s3 + $0x34] ss:$8 sps:$4 sm:$0xff]  }
  0x12   :  { %1027 = vmatprep.subr.bf16.mxu1 %v2100_v45  ;;  %v2108_v50 = vld [vmem:[%s2930_s3 + $0x30] ss:$8 sps:$4 sm:$0xff]   ;;  %v2109_v51 = vld [vmem:[%s2930_s3 + $0x44] ss:$8 sps:$4 sm:$0xff]   ;;  %v2111_v52 = vld [vmem:[%s2930_s3 + $0x40] ss:$8 sps:$4 sm:$0xff]  }
  0x13   :  { %324 = vmatpush1.bf16.msra.mxu0 %v2048_v10  ;;  %v2112_v53 = vld [vmem:[%s2930_s3 + $0x54] ss:$8 sps:$4 sm:$0xff]   ;;  %v2114_v54 = vld [vmem:[%s2930_s3 + $0x50] ss:$8 sps:$4 sm:$0xff]   ;;  %v2115_v55 = vld [vmem:[%s2930_s3 + $0x64] ss:$8 sps:$4 sm:$0xff]  }
  0x14   :  { %325 = vmatprep.subr.bf16.mxu0 %v2049_v11  ;;  %v2117_v56 = vld [vmem:[%s2930_s3 + $0x60] ss:$8 sps:$4 sm:$0xff]   ;;  %v2118_v57 = vld [vmem:[%s2930_s3 + $0x74] ss:$8 sps:$4 sm:$0xff]   ;;  %v2120_v58 = vld [vmem:[%s2930_s3 + $0x70] ss:$8 sps:$4 sm:$0xff]  }
  0x15   :  { %1028 = vmatpush1.bf16.msra.mxu1 %v2102_v46  ;;  %v2121_v59 = vld [vmem:[%s2930_s3 + $0x84] ss:$8 sps:$4 sm:$0xff]   ;;  %v2123_v60 = vld [vmem:[%s2930_s3 + $0x80] ss:$8 sps:$4 sm:$0xff]   ;;  %v2124_v61 = vld [vmem:[%s2930_s3 + $0x94] ss:$8 sps:$4 sm:$0xff]  }
  0x16   :  { %1029 = vmatprep.subr.bf16.mxu1 %v2103_v47  ;;  %v2126_v62 = vld [vmem:[%s2930_s3 + $0x90] ss:$8 sps:$4 sm:$0xff]   ;;  %v2127_v63 = vld [vmem:[%s2930_s3 + $0xa4] ss:$8 sps:$4 sm:$0xff]   ;;  %v2129_v0 = vld [vmem:[%s2930_s3 + $0xa0] ss:$8 sps:$4 sm:$0xff]  }
  0x17   :  { %326 = vmatpush1.bf16.msra.mxu0 %v2051_v12  ;;  %v2130_v1 = vld [vmem:[%s2930_s3 + $0xb4] ss:$8 sps:$4 sm:$0xff]   ;;  %v2132_v2 = vld [vmem:[%s2930_s3 + $0xb0] ss:$8 sps:$4 sm:$0xff]   ;;  %v2133_v3 = vld [vmem:[%s2930_s3 + $0xc4] ss:$8 sps:$4 sm:$0xff]  }
  0x18   :  { %327 = vmatprep.subr.bf16.mxu0 %v2052_v13  ;;  %v2135_v4 = vld [vmem:[%s2930_s3 + $0xc0] ss:$8 sps:$4 sm:$0xff]   ;;  %v2136_v5 = vld [vmem:[%s2930_s3 + $0xd4] ss:$8 sps:$4 sm:$0xff]   ;;  %v2138_v6 = vld [vmem:[%s2930_s3 + $0xd0] ss:$8 sps:$4 sm:$0xff]  }
  0x19   :  { %1030 = vmatpush1.bf16.msra.mxu1 %v2105_v48  ;;  %v2139_v7 = vld [vmem:[%s2930_s3 + $0xe4] ss:$8 sps:$4 sm:$0xff]   ;;  %v2141_v8 = vld [vmem:[%s2930_s3 + $0xe0] ss:$8 sps:$4 sm:$0xff]   ;;  %v2142_v9 = vld [vmem:[%s2930_s3 + $0xf4] ss:$8 sps:$4 sm:$0xff]  }
  0x1a   :  { %1031 = vmatprep.subr.bf16.mxu1 %v2106_v49  ;;  %v2144_v10 = vld [vmem:[%s2930_s3 + $0xf0] ss:$8 sps:$4 sm:$0xff]   ;;  %v2147_v11 = vld [vmem:[%s2930_s3 + $0x104] ss:$8 sps:$4 sm:$0xff]  }
  0x1b   :  { %328 = vmatpush1.bf16.msra.mxu0 %v2054_v14 }
  0x1c   :  { %329 = vmatprep.subr.bf16.mxu0 %v2055_v15 }
  0x1d   :  { %1032 = vmatpush1.bf16.msra.mxu1 %v2108_v50 }
  0x1e   :  { %1033 = vmatprep.subr.bf16.mxu1 %v2109_v51 }
  0x1f   :  { %330 = vmatpush1.bf16.msra.mxu0 %v2057_v16 }
  0x20   :  { %1789 = vmatprep.subr.msk.bf16.mxu0 %vm308_vm1, %v2058_v17 }
  0x21   :  { %1034 = vmatpush1.bf16.msra.mxu1 %v2111_v52  ;;  %v2590_v52 = vld [vmem:[%s2931_s2] ss:$0 sm:$0xff] }
  0x22   :  { %1035 = vmatprep.subr.bf16.mxu1 %v2112_v53 }
  0x23   :  { %332 = vmatpush1.bf16.msra.mxu0 %v310_v19 }
  0x25   :  { %1036 = vmatpush1.bf16.msra.mxu1 %v2114_v54 }
  0x26   :  { %348 = vmatmul.mubr.bf16.vlgmr.msra.gmra.mrb[0].mxu0 %v2061_v20  ;;  %1037 = vmatprep.subr.bf16.mxu1 %v2115_v55 }
  0x27   :  { %1791 = vmatprep.mubr.msk.bf16.mxu0 %vm271_vm0, %v2064_v21 }
  0x29   :  { %1038 = vmatpush1.bf16.msra.mxu1 %v2117_v56 }
  0x2a   :  { %1039 = vmatprep.subr.bf16.mxu1 %v2118_v57 }
  0x2d   :  { %1040 = vmatpush1.bf16.msra.mxu1 %v2120_v58 }
  0x2e   :  { %358 = vmatmul.mubr.bf16.gmra.mrb[4].mxu0 %v2066_v22  ;;  %1041 = vmatprep.subr.bf16.mxu1 %v2121_v59 }
  0x2f   :  { %1792 = vmatprep.mubr.msk.bf16.mxu0 %vm271_vm0, %v2067_v23 }
  0x31   :  { %1042 = vmatpush1.bf16.msra.mxu1 %v2123_v60 }
  0x32   :  { %1043 = vmatprep.subr.bf16.mxu1 %v2124_v61 }
  0x35   :  { %1044 = vmatpush1.bf16.msra.mxu1 %v2126_v62 }
  0x36   :  { %368 = vmatmul.mubr.bf16.gmra.mrb[8].mxu0 %v2069_v24  ;;  %1045 = vmatprep.subr.bf16.mxu1 %v2127_v63 }
  0x37   :  { %1793 = vmatprep.mubr.msk.bf16.mxu0 %vm271_vm0, %v2070_v25 }
  0x39   :  { %1046 = vmatpush1.bf16.msra.mxu1 %v2129_v0 }
  0x3a   :  { %1047 = vmatprep.subr.bf16.mxu1 %v2130_v1 }
  0x3d   :  { %1048 = vmatpush1.bf16.msra.mxu1 %v2132_v2 }
  0x3e   :  { %378 = vmatmul.mubr.bf16.gmra.mrb[12].mxu0 %v2072_v26  ;;  %1049 = vmatprep.subr.bf16.mxu1 %v2133_v3 }
  0x3f   :  { %1794 = vmatprep.mubr.msk.bf16.mxu0 %vm271_vm0, %v2073_v27 }
  0x41   :  { %1050 = vmatpush1.bf16.msra.mxu1 %v2135_v4 }
  0x42   :  { %1051 = vmatprep.subr.bf16.mxu1 %v2136_v5 }
  0x45   :  { %1052 = vmatpush1.bf16.msra.mxu1 %v2138_v6 }
  0x46   :  { %388 = vmatmul.mubr.bf16.gmra.mrb[16].mxu0 %v2075_v28  ;;  %1053 = vmatprep.subr.bf16.mxu1 %v2139_v7 }
  0x47   :  { %1795 = vmatprep.mubr.msk.bf16.mxu0 %vm271_vm0, %v2076_v29 }
  0x49   :  { %1054 = vmatpush1.bf16.msra.mxu1 %v2141_v8 }
  0x4a   :  { %1055 = vmatprep.subr.bf16.mxu1 %v2142_v9 }
  0x4d   :  { %1056 = vmatpush1.bf16.msra.mxu1 %v2144_v10 }
  0x4e   :  { %398 = vmatmul.mubr.bf16.gmra.mrb[20].mxu0 %v2078_v30  ;;  %1098 = vmatprep.subr.bf16.mxu1 %v2147_v11 }
  0x4f   :  { %1796 = vmatprep.mubr.msk.bf16.mxu0 %vm271_vm0, %v2079_v31 }
  0x56   :  { %408 = vmatmul.mubr.bf16.gmra.mrb[24].mxu0 %v2081_v32 }
  0x57   :  { %1797 = vmatprep.mubr.msk.bf16.mxu0 %vm271_vm0, %v2082_v33 }
  0x5e   :  { %418 = vmatmul.mubr.bf16.gmra.mrb[28].mxu0 %v2084_v34 }
  0x5f   :  { %1798 = vmatprep.mubr.msk.bf16.mxu0 %vm271_vm0, %v2085_v35 }
  0x66   :  { %428 = vmatmul.mubr.bf16.gmra.mrb[32].mxu0 %v2087_v36 }
  0x67   :  { %1799 = vmatprep.mubr.msk.bf16.mxu0 %vm271_vm0, %v2088_v37 }
  0x6e   :  { %438 = vmatmul.mubr.bf16.gmra.mrb[36].mxu0 %v2090_v38 }
  0x6f   :  { %1800 = vmatprep.mubr.msk.bf16.mxu0 %vm271_vm0, %v2091_v39 }
  0x76   :  { %448 = vmatmul.mubr.bf16.gmra.mrb[40].mxu0 %v2093_v40 }
  0x77   :  { %1801 = vmatprep.mubr.msk.bf16.mxu0 %vm271_vm0, %v2094_v41 }
  0x7e   :  { %458 = vmatmul.mubr.bf16.gmra.mrb[44].mxu0 %v2096_v42 }
  0xf9   :  { %v349_v12 = vpop.f32.mrb[0].mxu0 }
  0xfa   :  { %v351_v13 = vpop.f32.mrb[1].mxu0 }
  0xfb   :  { %v468_v14 = vmax.f32 %v349_v12, %v351_v13  ;;  %v353_v15 = vpop.f32.mrb[2].mxu0 }
  0xfc   :  { %v355_v16 = vpop.f32.mrb[3].mxu0 }
  0xfd   :  { %v469_v17 = vmax.f32 %v353_v15, %v355_v16 }
 0x101   :  { %v359_v18 = vpop.f32.mrb[4].mxu0 }
 0x102   :  { %v361_v19 = vpop.f32.mrb[5].mxu0 }
 0x103   :  { %v470_v20 = vmax.f32 %v359_v18, %v361_v19  ;;  %v363_v21 = vpop.f32.mrb[6].mxu0 }
 0x104   :  { %v365_v22 = vpop.f32.mrb[7].mxu0 }
 0x105   :  { %v471_v23 = vmax.f32 %v363_v21, %v365_v22 }
 0x109   :  { %v369_v24 = vpop.f32.mrb[8].mxu0 }
 0x10a   :  { %v371_v25 = vpop.f32.mrb[9].mxu0 }
 0x10b   :  { %v472_v26 = vmax.f32 %v369_v24, %v371_v25  ;;  %v373_v27 = vpop.f32.mrb[10].mxu0 }
 0x10c   :  { %v375_v28 = vpop.f32.mrb[11].mxu0 }
 0x10d   :  { %v473_v29 = vmax.f32 %v373_v27, %v375_v28 }
 0x111   :  { %v2551_v30 = vpop.f32.mrb[12].mxu0 }
 0x112   :  { %v2553_v31 = vpop.f32.mrb[13].mxu0 }
 0x113   :  { %v474_v32 = vmax.f32 %v2551_v30, %v2553_v31  ;;  %v2557_v33 = vpop.f32.mrb[14].mxu0 }
 0x114   :  { %v2559_v34 = vpop.f32.mrb[15].mxu0 }
 0x115   :  { %v475_v35 = vmax.f32 %v2557_v33, %v2559_v34  ;;  %v2218_v33 = vld [vmem:[%s2932_s5] sm:$0xff]   ;;  %v2219_v34 = vld [vmem:[%s2932_s5 + $0x48] sm:$0xff]  }
 0x119   :  { %v2563_v36 = vpop.f32.mrb[16].mxu0 }
 0x11a   :  { %v2565_v37 = vpop.f32.mrb[17].mxu0 }
 0x11b   :  { %v476_v38 = vmax.f32 %v2563_v36, %v2565_v37  ;;  %v2569_v39 = vpop.f32.mrb[18].mxu0  ;;  %v2148_v36 = vld [vmem:[%s2930_s3 + $0x110] ss:$8 sps:$4 sm:$0xff]   ;;  %v2153_v37 = vld [vmem:[%s2930_s3 + $0x124] ss:$8 sps:$4 sm:$0xff]  }
 0x11c   :  { %v2571_v40 = vpop.f32.mrb[19].mxu0 }
 0x11d   :  { %v477_v41 = vmax.f32 %v2569_v39, %v2571_v40  ;;  %v2222_v39 = vld [vmem:[%s2932_s5 + $0x10] sm:$0xff]  }
 0x121   :  { %v2575_v42 = vpop.f32.mrb[20].mxu0 }
 0x122   :  { %v2577_v43 = vpop.f32.mrb[21].mxu0 }
 0x123   :  { %v478_v44 = vmax.f32 %v2575_v42, %v2577_v43  ;;  %v2581_v45 = vpop.f32.mrb[22].mxu0  ;;  %v2154_v42 = vld [vmem:[%s2930_s3 + $0x130] ss:$8 sps:$4 sm:$0xff]   ;;  %v2159_v43 = vld [vmem:[%s2930_s3 + $0x144] ss:$8 sps:$4 sm:$0xff]  }
 0x124   :  { %v2583_v46 = vpop.f32.mrb[23].mxu0 }
 0x125   :  { %v479_v47 = vmax.f32 %v2581_v45, %v2583_v46  ;;  %v2226_v45 = vld [vmem:[%s2932_s5 + $0x20] sm:$0xff]  }
 0x129   :  { %v409_v48 = vpop.f32.mrb[24].mxu0 }
 0x12a   :  { %v411_v49 = vpop.f32.mrb[25].mxu0 }
 0x12b   :  { %v480_v50 = vmax.f32 %v409_v48, %v411_v49  ;;  %v413_v51 = vpop.f32.mrb[26].mxu0 }
 0x12c   :  { %v415_v53 = vpop.f32.mrb[27].mxu0 }
 0x12d   :  { %v492_v54 = vmax.f32 %v468_v14, %v480_v50  ;;  %v481_v55 = vmax.f32 %v413_v51, %v415_v53 }
 0x12f   :  { %v511_v56 = vadd.f32 %v2590_v52, %v492_v54  ;;  %v493_v57 = vmax.f32 %v469_v17, %v481_v55 }
 0x131   :  { %v512_v58 = vadd.f32 %v2590_v52, %v493_v57  ;;  %v419_v59 = vpop.f32.mrb[28].mxu0  ;;  %v523_v61 = vmax.f32 %v511_v56, 0.0 }
 0x132   :  { %v421_v60 = vpop.f32.mrb[29].mxu0 }
 0x133   :  { %v524_v62 = vmax.f32 %v512_v58, 0.0  ;;  %v482_v63 = vmax.f32 %v419_v59, %v421_v60  ;;  %v423_v0 = vpop.f32.mrb[30].mxu0  ;;  %v2217_v58 = vld [vmem:[%s2932_s5 + $0x40] sm:$0xff]   ;;  %v2150_v60 = vld [vmem:[%s2930_s3 + $0x114] ss:$8 sps:$4 sm:$0xff]  }
 0x134   :  { %v425_v1 = vpop.f32.mrb[31].mxu0  ;;  %v2145_v59 = vld [vmem:[%s2930_s3 + $0x100] ss:$8 sps:$4 sm:$0xff]   ;;  %1926 = vmatprep.subr.bf16.mxu0 %v2217_v58 }
 0x135   :  { %v494_v2 = vmax.f32 %v470_v20, %v482_v63  ;;  %v483_v3 = vmax.f32 %v423_v0, %v425_v1  ;;  %v535_v4 = vpack.c.bf16 %v524_v62, %v523_v61  ;;  %v2220_v61 = vld [vmem:[%s2932_s5 + $0x8] sm:$0xff]   ;;  %1927 = vmatpush3.bf16.msra.mxu0 %v2218_v33  ;;  %v2221_v1 = vld [vmem:[%s2932_s5 + $0x50] sm:$0xff]  }
 0x136   :  { %1928 = vmatprep.subr.bf16.mxu0 %v2219_v34  ;;  %v2175_v58 = vld [vmem:[%s2930_s3 + $0x1a0] ss:$8 sps:$4 sm:$0xff]   ;;  %v2186_v33 = vld [vmem:[%s2930_s3 + $0x1d4] ss:$8 sps:$4 sm:$0xff]   ;;  %v2184_v34 = vld [vmem:[%s2930_s3 + $0x1d0] ss:$8 sps:$4 sm:$0xff]  }
 0x137   :  { %v513_v5 = vadd.f32 %v2590_v52, %v494_v2  ;;  %v495_v6 = vmax.f32 %v471_v23, %v483_v3 }
 0x139   :  { %v525_v7 = vmax.f32 %v513_v5, 0.0  ;;  %v514_v8 = vadd.f32 %v2590_v52, %v495_v6  ;;  %v429_v9 = vpop.f32.mrb[32].mxu0  ;;  %1929 = vmatpush3.bf16.msra.mxu0 %v2220_v61  ;;  %v2192_v61 = vld [vmem:[%s2930_s3 + $0x1f4] ss:$8 sps:$4 sm:$0xff]  }
 0x13a   :  { %v431_v10 = vpop.f32.mrb[33].mxu0  ;;  %1930 = vmatprep.subr.bf16.mxu0 %v2221_v1  ;;  %v2198_v1 = vld [vmem:[%s2930_s3 + $0x214] ss:$8 sps:$4 sm:$0xff]  }
 0x13b   :  { %v526_v11 = vmax.f32 %v514_v8, 0.0  ;;  %v484_v12 = vmax.f32 %v429_v9, %v431_v10  ;;  %v433_v13 = vpop.f32.mrb[34].mxu0  ;;  %v2596_v14 = vpack.c.bf16 %v525_v7, %v524_v62  ;;  %v2151_v9 = vld [vmem:[%s2930_s3 + $0x120] ss:$8 sps:$4 sm:$0xff]  }
 0x13c   :  { %v435_v15 = vpop.f32.mrb[35].mxu0 }
 0x13d   :  { %v496_v16 = vmax.f32 %v472_v26, %v484_v12  ;;  %v485_v17 = vmax.f32 %v433_v13, %v435_v15  ;;  %v2598_v18 = vpack.c.bf16 %v526_v11, %v525_v7  ;;  %v2156_v12 = vld [vmem:[%s2930_s3 + $0x134] ss:$8 sps:$4 sm:$0xff]   ;;  %1931 = vmatpush3.bf16.msra.mxu0 %v2222_v39  ;;  %v2213_v39 = vld [vmem:[%s2930_s3 + $0x264] ss:$8 sps:$4 sm:$0xff]  }
 0x13e   :  { %v2224_v13 = vld [vmem:[%s2932_s5 + $0x18] sm:$0xff]  }
 0x13f   :  { %v515_v19 = vadd.f32 %v2590_v52, %v496_v16  ;;  %v497_v20 = vmax.f32 %v473_v29, %v485_v17 }
 0x141   :  { %v527_v21 = vmax.f32 %v515_v19, 0.0  ;;  %v516_v22 = vadd.f32 %v2590_v52, %v497_v20  ;;  %v439_v23 = vpop.f32.mrb[36].mxu0  ;;  %v2225_v19 = vld [vmem:[%s2932_s5 + $0x60] sm:$0xff]  }
 0x142   :  { %v441_v24 = vpop.f32.mrb[37].mxu0 }
 0x143   :  { %v528_v25 = vmax.f32 %v516_v22, 0.0  ;;  %v486_v27 = vmax.f32 %v439_v23, %v441_v24  ;;  %v443_v28 = vpop.f32.mrb[38].mxu0  ;;  %v2602_v48 = vpack.c.bf16 %v527_v21, %v526_v11  ;;  %v2162_v24 = vld [vmem:[%s2930_s3 + $0x154] ss:$8 sps:$4 sm:$0xff]  }
 0x144   :  { %v445_v49 = vpop.f32.mrb[39].mxu0 }
 0x145   :  { %v498_v26 = vmax.f32 %v474_v32, %v486_v27  ;;  %v487_v50 = vmax.f32 %v443_v28, %v445_v49  ;;  %v2607_v51 = vpack.c.bf16 %v528_v25, %v527_v21  ;;  %v2228_v25 = vld [vmem:[%s2932_s5 + $0x28] sm:$0xff]   ;;  %v2160_v28 = vld [vmem:[%s2930_s3 + $0x150] ss:$8 sps:$4 sm:$0xff]  }
 0x146   :  { %v2165_v49 = vld [vmem:[%s2930_s3 + $0x164] ss:$8 sps:$4 sm:$0xff]  }
 0x147   :  { %v499_v29 = vmax.f32 %v475_v35, %v487_v50  ;;  %v517_v53 = vadd.f32 %v2590_v52, %v498_v26  ;;  %v2163_v26 = vld [vmem:[%s2930_s3 + $0x160] ss:$8 sps:$4 sm:$0xff]   ;;  %v2168_v50 = vld [vmem:[%s2930_s3 + $0x174] ss:$8 sps:$4 sm:$0xff]  }
 0x149   :  { %v449_v54 = vpop.f32.mrb[40].mxu0  ;;  %v518_v55 = vadd.f32 %v2590_v52, %v499_v29  ;;  %v529_v56 = vmax.f32 %v517_v53, 0.0  ;;  %v2166_v29 = vld [vmem:[%s2930_s3 + $0x170] ss:$8 sps:$4 sm:$0xff]   ;;  %v2171_v53 = vld [vmem:[%s2930_s3 + $0x184] ss:$8 sps:$4 sm:$0xff]  }
 0x14a   :  { %v451_v57 = vpop.f32.mrb[41].mxu0 }
 0x14b   :  { %v488_v30 = vmax.f32 %v449_v54, %v451_v57  ;;  %v453_v31 = vpop.f32.mrb[42].mxu0  ;;  %v530_v32 = vmax.f32 %v518_v55, 0.0  ;;  %v2169_v54 = vld [vmem:[%s2930_s3 + $0x180] ss:$8 sps:$4 sm:$0xff]   ;;  %v2174_v55 = vld [vmem:[%s2930_s3 + $0x194] ss:$8 sps:$4 sm:$0xff]  }
 0x14c   :  { %v455_v35 = vpop.f32.mrb[43].mxu0  ;;  %v2177_v57 = vld [vmem:[%s2930_s3 + $0x1a4] ss:$8 sps:$4 sm:$0xff]  }
 0x14d   :  { %v500_v62 = vmax.f32 %v476_v38, %v488_v30  ;;  %v489_v63 = vmax.f32 %v453_v31, %v455_v35  ;;  %v537_v0 = vpack.c.bf16 %v530_v32, %v529_v56  ;;  %v2172_v56 = vld [vmem:[%s2930_s3 + $0x190] ss:$8 sps:$4 sm:$0xff]   ;;  %v2180_v30 = vld [vmem:[%s2930_s3 + $0x1b4] ss:$8 sps:$4 sm:$0xff]   ;;  %v2189_v35 = vld [vmem:[%s2930_s3 + $0x1e4] ss:$8 sps:$4 sm:$0xff]  }
 0x14e   :  { %v2178_v31 = vld [vmem:[%s2930_s3 + $0x1b0] ss:$8 sps:$4 sm:$0xff]  }
 0x14f   :  { %v519_v2 = vadd.f32 %v2590_v52, %v500_v62  ;;  %v501_v3 = vmax.f32 %v477_v41, %v489_v63  ;;  %1057 = vmatprep.mubr.bf16.mxu1 %v537_v0  ;;  %v2223_v41 = vld [vmem:[%s2932_s5 + $0x58] sm:$0xff]   ;;  %v2195_v63 = vld [vmem:[%s2930_s3 + $0x204] ss:$8 sps:$4 sm:$0xff]  }
 0x150   :  { %1058 = vmatmul.mubr.bf16.vlgmr.msra.gmra.mrb[0].mxu1 %v535_v4  ;;  %1932 = vmatprep.subr.bf16.mxu0 %v2223_v41  ;;  %v2190_v62 = vld [vmem:[%s2930_s3 + $0x1f0] ss:$8 sps:$4 sm:$0xff]   ;;  %v2216_v41 = vld [vmem:[%s2930_s3 + $0x274] ss:$8 sps:$4 sm:$0xff]  }
 0x151   :  { %v531_v38 = vmax.f32 %v519_v2, 0.0  ;;  %v520_v5 = vadd.f32 %v2590_v52, %v501_v3  ;;  %1099 = vmatpush1.bf16.msra.mxu1 %v2145_v59  ;;  %v459_v6 = vpop.f32.mrb[44].mxu0  ;;  %1933 = vmatpush3.bf16.msra.mxu0 %v2224_v13  ;;  %v2181_v59 = vld [vmem:[%s2930_s3 + $0x1c0] ss:$8 sps:$4 sm:$0xff]   ;;  %v2196_v2 = vld [vmem:[%s2930_s3 + $0x210] ss:$8 sps:$4 sm:$0xff]  }
 0x152   :  { %v461_v40 = vpop.f32.mrb[45].mxu0  ;;  %1100 = vmatprep.subr.bf16.mxu1 %v2150_v60  ;;  %1934 = vmatprep.subr.bf16.mxu0 %v2225_v19  ;;  %v2187_v60 = vld [vmem:[%s2930_s3 + $0x1e0] ss:$8 sps:$4 sm:$0xff]   ;;  %v2201_v3 = vld [vmem:[%s2930_s3 + $0x224] ss:$8 sps:$4 sm:$0xff]  }
 0x153   :  { %v532_v4 = vmax.f32 %v520_v5, 0.0  ;;  %v490_v7 = vmax.f32 %v459_v6, %v461_v40  ;;  %v463_v8 = vpop.f32.mrb[46].mxu0  ;;  %v2658_v10 = vpack.c.bf16 %v531_v38, %v530_v32  ;;  %v2183_v32 = vld [vmem:[%s2930_s3 + $0x1c4] ss:$8 sps:$4 sm:$0xff]   ;;  %v2205_v5 = vld [vmem:[%s2930_s3 + $0x240] ss:$8 sps:$4 sm:$0xff]  }
 0x154   :  { %v465_v11 = vpop.f32.mrb[47].mxu0  ;;  %v2208_v6 = vld [vmem:[%s2930_s3 + $0x250] ss:$8 sps:$4 sm:$0xff]   ;;  %v2211_v40 = vld [vmem:[%s2930_s3 + $0x260] ss:$8 sps:$4 sm:$0xff]  }
 0x155   :  { %v502_v15 = vmax.f32 %v478_v44, %v490_v7  ;;  %v491_v16 = vmax.f32 %v463_v8, %v465_v11  ;;  %1101 = vmatpush1.bf16.msra.mxu1 %v2148_v36  ;;  %v2669_v17 = vpack.c.bf16 %v532_v4, %v531_v38  ;;  %1935 = vmatpush3.bf16.msra.mxu0 %v2226_v45  ;;  %v2199_v36 = vld [vmem:[%s2930_s3 + $0x220] ss:$8 sps:$4 sm:$0xff]   ;;  %v2207_v38 = vld [vmem:[%s2930_s3 + $0x244] ss:$8 sps:$4 sm:$0xff]   ;;  %v2261_v7 = vmov 0   ;;  %v2229_v8 = vld [vmem:[%s2932_s5 + $0x70] sm:$0xff]  }
 0x156   :  { %1102 = vmatprep.subr.bf16.mxu1 %v2153_v37  ;;  %v2202_v37 = vld [vmem:[%s2930_s3 + $0x230] ss:$8 sps:$4 sm:$0xff]  }
 0x157   :  { %v521_v20 = vadd.f32 %v2590_v52, %v502_v15  ;;  %v503_v21 = vmax.f32 %v479_v47, %v491_v16  ;;  %1067 = vmatprep.mubr.bf16.mxu1 %v2669_v17  ;;  %v2157_v47 = vld [vmem:[%s2930_s3 + $0x140] ss:$8 sps:$4 sm:$0xff]  }
 0x158   :  { %1068 = vmatmul.mubr.bf16.gmra.mrb[4].mxu1 %v2598_v18 }
 0x159   :  { %v533_v44 = vmax.f32 %v521_v20, 0.0  ;;  %v522_v22 = vadd.f32 %v2590_v52, %v503_v21  ;;  %1103 = vmatpush1.bf16.msra.mxu1 %v2151_v9  ;;  %1077 = vmatprep.mubr.bf16.mxu1 %v2596_v14  ;;  %v2227_v52 = vld [vmem:[%s2932_s5 + $0x68] sm:$0xff]   ;;  %v2230_v9 = vld [vmem:[%s2932_s5 + $0x30] sm:$0xff]  }
 0x15a   :  { %1104 = vmatprep.subr.bf16.mxu1 %v2156_v12  ;;  %1936 = vmatprep.subr.bf16.mxu0 %v2227_v52 }
 0x15b   :  { %v534_v46 = vmax.f32 %v522_v22, 0.0  ;;  %v2694_v23 = vpack.c.bf16 %v533_v44, %v532_v4  ;;  %1937 = vmatpush3.bf16.msra.mxu0 %v2228_v25  ;;  %v2214_v4 = vld [vmem:[%s2930_s3 + $0x270] ss:$8 sps:$4 sm:$0xff]  }
 0x15c   :  { %1938 = vmatprep.subr.bf16.mxu0 %v2229_v8  ;;  %v2251_v8 = vld [vmem:[%s2934_s7 + $0x10] sm:$0xff]  }
 0x15d   :  { %1105 = vmatpush1.bf16.msra.mxu1 %v2154_v42  ;;  %v2705_v27 = vpack.c.bf16 %v534_v46, %v533_v44 }
 0x15e   :  { %1106 = vmatprep.subr.bf16.mxu1 %v2159_v43 }
 0x15f   :  { %1939 = vmatpush3.bf16.msra.mxu0 %v2230_v9  ;;  %v2252_v9 = vld [vmem:[%s2934_s7 + $0x18] sm:$0xff]  }
 0x160   :  { %1078 = vmatmul.mubr.bf16.gmra.mrb[8].mxu1 %v537_v0  ;;  %v2193_v0 = vld [vmem:[%s2930_s3 + $0x200] ss:$8 sps:$4 sm:$0xff]  }
 0x161   :  { %1107 = vmatpush1.bf16.msra.mxu1 %v2157_v47  ;;  %1087 = vmatprep.mubr.bf16.mxu1 %v2602_v48 }
 0x162   :  { %1108 = vmatprep.subr.bf16.mxu1 %v2162_v24 }
 0x165   :  { %1109 = vmatpush1.bf16.msra.mxu1 %v2160_v28 }
 0x166   :  { %1110 = vmatprep.subr.bf16.mxu1 %v2165_v49 }
 0x168   :  { %1088 = vmatmul.mubr.bf16.gmra.mrb[12].mxu1 %v2669_v17 }
 0x169   :  { %1111 = vmatpush1.bf16.msra.mxu1 %v2163_v26  ;;  %1130 = vmatprep.mubr.bf16.mxu1 %v2658_v10 }
 0x16a   :  { %1112 = vmatprep.subr.bf16.mxu1 %v2168_v50 }
 0x16d   :  { %1113 = vmatpush1.bf16.msra.mxu1 %v2166_v29 }
 0x16e   :  { %1114 = vmatprep.subr.bf16.mxu1 %v2171_v53 }
 0x171   :  { %1115 = vmatpush1.bf16.msra.mxu1 %v2169_v54 }
 0x172   :  { %1116 = vmatprep.subr.bf16.mxu1 %v2174_v55 }
 0x175   :  { %1117 = vmatpush1.bf16.msra.mxu1 %v2172_v56 }
 0x176   :  { %1118 = vmatprep.subr.bf16.mxu1 %v2177_v57 }
 0x179   :  { %1119 = vmatpush1.bf16.msra.mxu1 %v2175_v58 }
 0x17a   :  { %1120 = vmatprep.subr.bf16.mxu1 %v2180_v30 }
 0x17d   :  { %1121 = vmatpush1.bf16.msra.mxu1 %v2178_v31  ;;  %v2234_v31 = vld [vmem:[%s2932_s5 + $0x80] sm:$0xff]  }
 0x17e   :  { %1122 = vmatprep.subr.bf16.mxu1 %v2183_v32 }
 0x181   :  { %1123 = vmatpush1.bf16.msra.mxu1 %v2181_v59  ;;  %v2235_v59 = vld [vmem:[%s2932_s5 + $0xc8] sm:$0xff]  }
 0x182   :  { %1124 = vmatprep.subr.bf16.mxu1 %v2186_v33 }
 0x185   :  { %1125 = vmatpush1.bf16.msra.mxu1 %v2184_v34 }
 0x186   :  { %1126 = vmatprep.subr.bf16.mxu1 %v2189_v35  ;;  %v2236_v35 = vld [vmem:[%s2932_s5 + $0x88] sm:$0xff]  }
 0x189   :  { %1127 = vmatpush1.bf16.msra.mxu1 %v2187_v60  ;;  %v2237_v60 = vld [vmem:[%s2932_s5 + $0xd0] sm:$0xff]  }
 0x18a   :  { %1128 = vmatprep.subr.bf16.mxu1 %v2192_v61 }
 0x18d   :  { %1129 = vmatpush1.bf16.msra.mxu1 %v2190_v62 }
 0x18e   :  { %1171 = vmatprep.subr.bf16.mxu1 %v2195_v63  ;;  %v2238_v63 = vld [vmem:[%s2932_s5 + $0x90] sm:$0xff]  }
 0x190   :  { %1131 = vmatmul.mubr.bf16.vlgmr.msra.gmra.mrb[0].mxu1 %v2596_v14  ;;  %v2204_v14 = vld [vmem:[%s2930_s3 + $0x234] ss:$8 sps:$4 sm:$0xff]  }
 0x191   :  { %1140 = vmatprep.mubr.bf16.mxu1 %v2694_v23  ;;  %1172 = vmatpush1.bf16.msra.mxu1 %v2193_v0  ;;  %v2239_v0 = vld [vmem:[%s2932_s5 + $0xd8] sm:$0xff]  }
 0x192   :  { %1173 = vmatprep.subr.bf16.mxu1 %v2198_v1  ;;  %v2240_v1 = vld [vmem:[%s2932_s5 + $0x98] sm:$0xff]  }
 0x195   :  { %1174 = vmatpush1.bf16.msra.mxu1 %v2196_v2  ;;  %v2241_v2 = vld [vmem:[%s2932_s5 + $0xe0] sm:$0xff]  }
 0x196   :  { %1175 = vmatprep.subr.bf16.mxu1 %v2201_v3  ;;  %v2242_v3 = vld [vmem:[%s2932_s5 + $0xa0] sm:$0xff]  }
 0x198   :  { %1141 = vmatmul.mubr.bf16.gmra.mrb[4].mxu1 %v2602_v48  ;;  %v2210_v48 = vld [vmem:[%s2930_s3 + $0x254] ss:$8 sps:$4 sm:$0xff]  }
 0x199   :  { %1150 = vmatprep.mubr.bf16.mxu1 %v2598_v18  ;;  %1176 = vmatpush1.bf16.msra.mxu1 %v2199_v36  ;;  %v2243_v36 = vld [vmem:[%s2932_s5 + $0xe8] sm:$0xff]  }
 0x19a   :  { %1177 = vmatprep.subr.bf16.mxu1 %v2204_v14  ;;  %v2244_v14 = vld [vmem:[%s2932_s5 + $0xa8] sm:$0xff]  }
 0x19d   :  { %1178 = vmatpush1.bf16.msra.mxu1 %v2202_v37  ;;  %v2245_v37 = vld [vmem:[%s2932_s5 + $0xf0] sm:$0xff]  }
 0x19e   :  { %1179 = vmatprep.subr.bf16.mxu1 %v2207_v38  ;;  %v2246_v38 = vld [vmem:[%s2932_s5 + $0xb0] sm:$0xff]  }
 0x1a0   :  { %1151 = vmatmul.mubr.bf16.gmra.mrb[8].mxu1 %v2658_v10  ;;  %v2233_v10 = vld [vmem:[%s2932_s5 + $0xc0] sm:$0xff]  }
 0x1a1   :  { %1160 = vmatprep.mubr.bf16.mxu1 %v2607_v51  ;;  %1180 = vmatpush1.bf16.msra.mxu1 %v2205_v5 }
 0x1a2   :  { %1181 = vmatprep.subr.bf16.mxu1 %v2210_v48  ;;  %v2247_v48 = vld [vmem:[%s2932_s5 + $0xf8] sm:$0xff]  }
 0x1a5   :  { %1182 = vmatpush1.bf16.msra.mxu1 %v2208_v6  ;;  %v2248_v6 = vld [vmem:[%s2932_s5 + $0xb8] sm:$0xff]  }
 0x1a6   :  { %1183 = vmatprep.subr.bf16.mxu1 %v2213_v39 }
 0x1a8   :  { %1161 = vmatmul.mubr.bf16.gmra.mrb[12].mxu1 %v2694_v23  ;;  %v1883_v23 = vld [vmem:[%s2933_s4] ss:$0 sm:$0xff] }
 0x1a9   :  { %1184 = vmatpush1.bf16.msra.mxu1 %v2211_v40  ;;  %1203 = vmatprep.mubr.bf16.mxu1 %v2261_v7 }
 0x1aa   :  { %1185 = vmatprep.subr.bf16.mxu1 %v2216_v41  ;;  %v2262_v41 = vmov 0.0  }
 0x1ad   :  { %1186 = vmatpush1.bf16.msra.mxu1 %v2214_v4  ;;  %v2249_v4 = vld [vmem:[%s2934_s7] sm:$0xff]  }
 0x1ae   :  { %1979 = vmatprep.subr.bf16.mxu1 %v2262_v41 }
 0x1b0   :  { %1204 = vmatmul.mubr.bf16.vlgmr.msra.gmra.mrb[0].mxu1 %v2598_v18  ;;  %v2231_v18 = vld [vmem:[%s2932_s5 + $0x78] sm:$0xff]  }
 0x1b1   :  { %1213 = vmatprep.mubr.bf16.mxu1 %v2261_v7  ;;  %1940 = vmatprep.subr.bf16.mxu0 %v2231_v18  ;;  %v2253_v18 = vld [vmem:[%s2934_s7 + $0x20] sm:$0xff]  }
 0x1b2   :  { %1980 = vmatpush3.bf16.msra.mxu1 %v2249_v4 }
 0x1b3   :  { %1981 = vmatprep.subr.bf16.mxu1 %v2262_v41 }
 0x1b8   :  { %1214 = vmatmul.mubr.bf16.gmra.mrb[4].mxu1 %v2607_v51  ;;  %v2232_v51 = vld [vmem:[%s2932_s5 + $0x38] sm:$0xff]  }
 0x1b9   :  { %1223 = vmatprep.mubr.bf16.mxu1 %v2261_v7  ;;  %1941 = vmatpush3.bf16.msra.mxu0 %v2232_v51  ;;  %v2254_v51 = vld [vmem:[%s2934_s7 + $0x28] sm:$0xff]  }
 0x1ba   :  { %1948 = vmatprep.subr.bf16.mxu0 %v2233_v10  ;;  %v2255_v10 = vld [vmem:[%s2934_s7 + $0x30] sm:$0xff]  }
 0x1c0   :  { %1224 = vmatmul.mubr.bf16.gmra.mrb[8].mxu1 %v2669_v17 }
 0x1c1   :  { %1233 = vmatprep.mubr.bf16.mxu1 %v2261_v7  ;;  %v2250_v7 = vld [vmem:[%s2934_s7 + $0x8] sm:$0xff]  }
 0x1c2   :  { %1982 = vmatpush3.bf16.msra.mxu1 %v2250_v7 }
 0x1c3   :  { %1983 = vmatprep.subr.bf16.mxu1 %v2262_v41 }
 0x1c6   :  { %1984 = vmatpush3.bf16.msra.mxu1 %v2251_v8 }
 0x1c7   :  { %1985 = vmatprep.subr.bf16.mxu1 %v2262_v41 }
 0x1c8   :  { %1234 = vmatmul.mubr.bf16.gmra.mrb[12].mxu1 %v2705_v27 }
 0x1c9   :  { %1995 = vmatprep.mubr.msk.bf16.mxu1 %vm2263_vm2, %v2262_v41 }
 0x1ca   :  { %1986 = vmatpush3.bf16.msra.mxu1 %v2252_v9 }
 0x1cb   :  { %1987 = vmatprep.subr.bf16.mxu1 %v2262_v41 }
 0x1ce   :  { %1988 = vmatpush3.bf16.msra.mxu1 %v2253_v18 }
 0x1cf   :  { %1989 = vmatprep.subr.bf16.mxu1 %v2262_v41 }
 0x1d2   :  { %1990 = vmatpush3.bf16.msra.mxu1 %v2254_v51 }
 0x1d3   :  { %1991 = vmatprep.subr.bf16.mxu1 %v2262_v41 }
 0x1d6   :  { %1992 = vmatpush3.bf16.msra.mxu1 %v2255_v10 }
 0x1d7   :  { %1993 = vmatprep.subr.bf16.mxu1 %v2262_v41 }
 0x283   :  { %v1205_v11 = vpop.f32.mrb[0].mxu1 }
 0x284   :  { %v1207_v12 = vpop.f32.mrb[1].mxu1 }
 0x285   :  { %v1244_v13 = vmax.f32 %v1205_v11, %v1207_v12  ;;  %v1209_v15 = vpop.f32.mrb[2].mxu1  ;;  %v2256_v11 = vld [vmem:[%s2934_s7 + $0x38] sm:$0xff]  }
 0x286   :  { %v1211_v16 = vpop.f32.mrb[3].mxu1  ;;  %1994 = vmatpush3.bf16.msra.mxu1 %v2256_v11 }
 0x287   :  { %v1245_v17 = vmax.f32 %v1209_v15, %v1211_v16 }
 0x28b   :  { %v1215_v19 = vpop.f32.mrb[4].mxu1 }
 0x28c   :  { %v1217_v20 = vpop.f32.mrb[5].mxu1 }
 0x28d   :  { %v1246_v21 = vmax.f32 %v1215_v19, %v1217_v20  ;;  %v1219_v42 = vpop.f32.mrb[6].mxu1  ;;  %v1884_v19 = vld [vmem:[%s2935_s6] ss:$0 sm:$0xff] }
 0x28e   :  { %v1221_v43 = vpop.f32.mrb[7].mxu1 }
 0x28f   :  { %v1247_v44 = vmax.f32 %v1219_v42, %v1221_v43 }
 0x293   :  { %v1225_v22 = vpop.f32.mrb[8].mxu1 }
 0x294   :  { %v1227_v45 = vpop.f32.mrb[9].mxu1 }
 0x295   :  { %v1248_v46 = vmax.f32 %v1225_v22, %v1227_v45  ;;  %v1229_v47 = vpop.f32.mrb[10].mxu1 }
 0x296   :  { %v1231_v52 = vpop.f32.mrb[11].mxu1 }
 0x297   :  { %v1252_v24 = vmax.f32 %v1244_v13, %v1248_v46  ;;  %v1249_v25 = vmax.f32 %v1229_v47, %v1231_v52 }
 0x299   :  { %v1263_v27 = vadd.f32 %v1883_v23, %v1252_v24  ;;  %v1253_v28 = vmax.f32 %v1245_v17, %v1249_v25 }
 0x29b   :  { %v1264_v49 = vadd.f32 %v1883_v23, %v1253_v28  ;;  %v1235_v26 = vpop.f32.mrb[12].mxu1  ;;  %v1267_v50 = vmax.f32 %v1263_v27, 0.0 }
 0x29c   :  { %v1237_v29 = vpop.f32.mrb[13].mxu1 }
 0x29d   :  { %v1250_v53 = vmax.f32 %v1235_v26, %v1237_v29  ;;  %v1239_v54 = vpop.f32.mrb[14].mxu1  ;;  %v1268_v55 = vmax.f32 %v1264_v49, 0.0  ;;  %v1271_v32 = vpack.c.bf16 %v1267_v50, %v1267_v50 }
 0x29e   :  { %v1241_v56 = vpop.f32.mrb[15].mxu1 }
 0x29f   :  { %v1254_v57 = vmax.f32 %v1246_v21, %v1250_v53  ;;  %v1251_v58 = vmax.f32 %v1239_v54, %v1241_v56  ;;  %v1272_v30 = vpack.c.bf16 %v1268_v55, %v1268_v55 }
 0x2a1   :  { %v1255_v33 = vmax.f32 %v1247_v44, %v1251_v58  ;;  %1570 = vmatprep.mubr.bf16.mxu0 %v1272_v30  ;;  %v1265_v5 = vadd.f32 %v1883_v23, %v1254_v57 }
 0x2a2   :  { %1571 = vmatmul.mubr.bf16.vlgmr.msra.gmra.mrb[48].mxu0 %v1271_v32 }
 0x2a3   :  { %v1266_v34 = vadd.f32 %v1883_v23, %v1255_v33  ;;  %1949 = vmatpush3.bf16.msra.mxu0 %v2234_v31  ;;  %v1269_v39 = vmax.f32 %v1265_v5, 0.0  ;;  %v1917_v23 = vld [vmem:[%s2936_s8] ss:$0 sm:$0xff] }
 0x2a4   :  { %1950 = vmatprep.subr.bf16.mxu0 %v2235_v59 }
 0x2a5   :  { %v1270_v61 = vmax.f32 %v1266_v34, 0.0  ;;  %v1273_v40 = vpack.c.bf16 %v1269_v39, %v1269_v39 }
 0x2a7   :  { %1951 = vmatpush3.bf16.msra.mxu0 %v2236_v35  ;;  %v1274_v62 = vpack.c.bf16 %v1270_v61, %v1270_v61 }
 0x2a8   :  { %1952 = vmatprep.subr.bf16.mxu0 %v2237_v60 }
 0x2a9   :  { %1610 = vmatprep.mubr.bf16.mxu0 %v1274_v62 }
 0x2ab   :  { %1953 = vmatpush3.bf16.msra.mxu0 %v2238_v63 }
 0x2ac   :  { %1954 = vmatprep.subr.bf16.mxu0 %v2239_v0 }
 0x2af   :  { %1955 = vmatpush3.bf16.msra.mxu0 %v2240_v1 }
 0x2b0   :  { %1956 = vmatprep.subr.bf16.mxu0 %v2241_v2 }
 0x2b3   :  { %1957 = vmatpush3.bf16.msra.mxu0 %v2242_v3 }
 0x2b4   :  { %1958 = vmatprep.subr.bf16.mxu0 %v2243_v36 }
 0x2b7   :  { %1959 = vmatpush3.bf16.msra.mxu0 %v2244_v14 }
 0x2b8   :  { %1960 = vmatprep.subr.bf16.mxu0 %v2245_v37 }
 0x2bb   :  { %1961 = vmatpush3.bf16.msra.mxu0 %v2246_v38 }
 0x2bc   :  { %1962 = vmatprep.subr.bf16.mxu0 %v2247_v48 }
 0x2bf   :  { %1963 = vmatpush3.bf16.msra.mxu0 %v2248_v6 }
 0x2c2   :  { %1611 = vmatmul.mubr.bf16.vlgmr.msra.gmra.mrb[52].mxu0 %v1273_v40 }
 0x375   :  { %v1942_v12 = vpop.f32.mrb[48].mxu0 }
 0x376   :  { %v1943_v13 = vpop.f32.mrb[49].mxu0 }
 0x377   :  { %v1944_v15 = vadd.f32 %v1943_v13, %v1942_v12  ;;  %v1945_v16 = vpop.f32.mrb[50].mxu0 }
 0x378   :  { %v1946_v17 = vpop.f32.mrb[51].mxu0 }
 0x379   :  { %v1573_v42 = vadd.f32 %v1944_v15, %v1884_v19 }
 0x395   :  { %v1964_v20 = vpop.f32.mrb[52].mxu0 }
 0x396   :  { %v1965_v21 = vpop.f32.mrb[53].mxu0 }
 0x397   :  { %v1966_v43 = vadd.f32 %v1965_v21, %v1964_v20  ;;  %v1967_v44 = vpop.f32.mrb[54].mxu0 }
 0x398   :  { %v1968_v22 = vpop.f32.mrb[55].mxu0 }
 0x399   :  { %v1613_v45 = vadd.f32 %v1966_v43, %v1573_v42 }
 0x39b   :  { %v1618_v46 = vmax.f32 %v1613_v45, 0.0 }
 0x39d   :  { %v1619_v47 = vpack.c.bf16 %v1618_v46, %v1618_v46 }
 0x39f   :  { %1996 = vmatmul.mubr.bf16.vlgmr.msra.gmra.mrb[16].mxu1 %v1619_v47 }
 0x472   :  { %v1725_v52 = vpop.f32.mrb[16].mxu1 }
 0x473   :  { %v1726_v24 = vadd.f32 %v1917_v23, %v1725_v52  ;;  %v1997_v25 = vpop.f32.mrb[17].mxu1 }
 0x474   :  { %v1728_v27 = vpop.f32.mrb[18].mxu1 }
 0x475   :  { %1731 = vmax.xlane.f32.xlu0 %v1726_v24  ;;  %v1998_v28 = vpop.f32.mrb[19].mxu1 }
 0x502   :  { %v1732_v49 = vpop.xlane.xlu0 %1731 }
 0x503   :  { %v1733_v26 = vsub.f32 %v1726_v24, %v1732_v49 }
 0x505   :  { %v1734_v50 = vmul.f32 1.442695, %v1733_v26 }
 0x507   :  { %2257 = vpow2.f32 %v1734_v50 }
 0x511   :  { %v2258_v29 = vpop.eup %2257 }
 0x512   :  { %1736 = vadd.xlane.f32.xlu0 %v2258_v29 }
 0x59f   :  { %v1737_v53 = vpop.xlane.xlu0 %1736 }
 0x5a0   :  { %2259 = vlog2.f32 %v1737_v53 }
 0x5aa   :  { %v2260_v54 = vpop.eup %2259 }
 0x5ab   :  { %v1739_v55 = vmul.f32 0.6931472, %v2260_v54 }
 0x5ad   :  { %v1740_v56 = vadd.f32 %v1739_v55, %v1732_v49 }
 0x5af   :  { %v1741_v57 = vsub.f32 %v1726_v24, %v1740_v56 }
 0x5b1   :  { %1742 = vst [vmem:[%s2937_s9] sm:$0xff] %v1741_v57 }

</bundles_post_ra>
